<compile_context>
chip_gen: v5e
topology: v5e:2x2
jax: 0.10.0
libtpu: 0.0.40
codegen_flags: <defaults>
</compile_context>

<pallas_src>
import functools
import math

import jax
import jax.numpy as jnp
from jax.experimental import pallas as pl
from jax.experimental.pallas import tpu as pltpu


def _tlu_kernel(x_ref, o_ref, *, threshold):
    x = x_ref[...]
    t = jnp.asarray(threshold, dtype=x.dtype)
    # clamp(x, -t, t) — pure VPU elementwise (matches torch.clamp semantics,
    # including the degenerate t < 0 case where min(max(x,-t),t) == t).
    o_ref[...] = jnp.minimum(jnp.maximum(x, -t), t)


def _choose_lane_width(total_elems: int):
    """Largest lane width (multiple of 128) that evenly divides the element count."""
    for lanes in (4096, 2048, 1024, 512, 256, 128):
        if total_elems % lanes == 0:
            return lanes
    return None


def _chip_budget():
    """(default block bytes, VMEM capacity bytes) for the current TPU generation."""
    vmem_cap = 128 << 20
    try:
        vmem_cap = int(pltpu.get_tpu_info().vmem_capacity_bytes)
    except Exception:
        pass
    kind = ""
    try:
        kind = jax.devices()[0].device_kind.lower()
    except Exception:
        pass
    if vmem_cap <= (64 << 20):
        # v7x-class: 64 MiB physical VMEM per TC — keep 4*block well under it.
        block = 4 << 20
    elif "v5" in kind:
        # v5e: 16 MiB scoped default — 4*3 MiB + headroom still fits comfortably.
        block = 3 << 20
    else:
        # v6e-class 128 MiB chips: bigger blocks amortize per-grid-step overhead.
        block = 8 << 20
    return block, vmem_cap


def _round_rows(target_rows, rows, sublane):
    """Round the row tile down to a sublane multiple; prefer one dividing rows."""
    tr = (target_rows // sublane) * sublane
    tr = max(sublane, tr)
    if tr >= rows:
        return rows
    cand = tr
    while cand >= max(sublane, tr // 2):
        if rows % cand == 0:
            return cand   # even split → every store is a full unmasked tile
        cand -= sublane
    return tr


def tlu(x, threshold: float, *, block_bytes: int | None = None, donate_input: bool = False):
    """Pallas TPU implementation of TLU.forward (torch.clamp(x, -t, t))."""
    orig_shape = x.shape
    total = math.prod(orig_shape) if orig_shape else 1
    if total == 0:
        return x
    dtype_bytes = jnp.dtype(x.dtype).itemsize
    sublane = {1: 32, 2: 16, 4: 8}.get(dtype_bytes, 8)

    default_block, vmem_cap = _chip_budget()
    if block_bytes is None:
        block_bytes = default_block

    # ---- lane-dense 2D view -------------------------------------------------
    lanes = _choose_lane_width(total)
    if lanes is not None:
        rows, cols = total // lanes, lanes
    else:
        # Non-128-divisible total: collapse trailing dims until the lane axis is
        # wide (>= ~1024). Only the final <128-lane remainder of each row is
        # masked instead of most of every vreg/store.
        cols = 1
        for d in reversed(orig_shape):
            if cols >= 1024:
                break
            cols *= int(d)
        cols = max(cols, 1)
        rows = total // cols
    x2d = x.reshape(rows, cols)

    # ---- tile selection ------------------------------------------------------
    row_bytes = cols * dtype_bytes
    if total * dtype_bytes <= block_bytes:
        # Whole array fits in one block (full-extent dims are always legal).
        tr, tc = rows, cols
    elif row_bytes * sublane <= block_bytes:
        # Row tiling: ~block_bytes per tile so in+out double buffers (~4x block)
        # stay well inside the scoped VMEM budget on every generation.
        tr, tc = _round_rows(block_bytes // row_bytes, rows, sublane), cols
    else:
        # A single row exceeds the block budget: tile columns too (2D grid),
        # column tile a multiple of 128 so stores stay lane-dense.
        tr = rows if rows < sublane else (min(rows, 8 * sublane) // sublane) * sublane
        tc_budget = max(128, block_bytes // max(1, tr * dtype_bytes))
        tc = (min(cols, tc_budget) // 128) * 128
        if tc <= 0:
            tc = cols

    grid = (pl.cdiv(rows, tr), pl.cdiv(cols, tc))

    # vmem_limit: double-buffered input + output tiles (~4x block) + headroom,
    # capped well below the physical VMEM of this chip (matters on v7x: 64 MiB).
    block_actual = tr * tc * dtype_bytes
    vmem_limit = int(min(vmem_cap * 3 // 4, 4 * block_actual + (16 << 20)))

    kernel = functools.partial(_tlu_kernel, threshold=threshold)

    out2d = pl.pallas_call(
        kernel,
        out_shape=jax.ShapeDtypeStruct((rows, cols), x2d.dtype),
        grid=grid,
        in_specs=[pl.BlockSpec((tr, tc), lambda i, j: (i, j))],
        out_specs=pl.BlockSpec((tr, tc), lambda i, j: (i, j)),
        compiler_params=pltpu.CompilerParams(
            # No reduction axes; "parallel" lets v7x split the grid across its
            # two TensorCores (no-op on single-TC v5e/v6e).
            dimension_semantics=("parallel", "parallel"),
            vmem_limit_bytes=vmem_limit,
        ),
        cost_estimate=pl.CostEstimate(
            flops=2 * total,
            transcendentals=0,
            bytes_accessed=2 * total * dtype_bytes,
        ),
        input_output_aliases=({0: 0} if donate_input else {}),
    )(x2d)

    return out2d.reshape(orig_shape)


if __name__ == "__main__":
    key = jax.random.PRNGKey(0)
    k0, k1 = jax.random.split(key)

    # Small NCHW input consistent with a conv-net feature map.
    x = jax.random.normal(k0, (2, 4, 16, 16), dtype=jnp.float32) * 3.0
    threshold = 1.0  # module __init__ argument

    out = jax.block_until_ready(tlu(x, threshold))
    ref = jnp.clip(x, -threshold, threshold)
    assert out.shape == x.shape
    assert out.dtype == x.dtype
    assert jnp.allclose(out, ref), "mismatch vs reference clamp (f32 path)"

    # Exercise the non-128-divisible fallback path and bf16 sublane handling.
    x2 = (jax.random.normal(k1, (3, 5, 7, 9), dtype=jnp.float32) * 3.0).astype(jnp.bfloat16)
    t2 = 0.5
    out2 = jax.block_until_ready(tlu(x2, t2))
    ref2 = jnp.minimum(jnp.maximum(x2, jnp.bfloat16(-t2)), jnp.bfloat16(t2))
    assert out2.shape == x2.shape and out2.dtype == x2.dtype
    assert jnp.array_equal(out2, ref2), "mismatch vs reference clamp (bf16 fallback path)"

    print("KERNEL_OK")
</pallas_src>

<mosaic_0001>
module attributes {stable_mosaic.version = 11 : i64} {
  func.func @_tlu_kernel(%arg0: i32, %arg1: i32, %arg2: memref<1x2048xf32, #tpu.memory_space<vmem>>, %arg3: memref<1x2048xf32, #tpu.memory_space<vmem>>) attributes {dimension_semantics = [#tpu.dimension_semantics<parallel>, #tpu.dimension_semantics<parallel>], iteration_bounds = array<i64: 1, 1>, scalar_prefetch = 0 : i64, scratch_operands = 0 : i64, tpu.core_type = #tpu.core_type<tc>, window_params = [{transform_indices = @transform_0, window_bounds = array<i64: 1, 2048>}, {transform_indices = @transform_1, window_bounds = array<i64: 1, 2048>}]} {
    %c0 = arith.constant 0 : index
    %c0_0 = arith.constant 0 : index
    %0 = vector.load %arg2[%c0, %c0_0] : memref<1x2048xf32, #tpu.memory_space<vmem>>, vector<1x2048xf32>
    %cst = arith.constant 0.000000e+00 : f32
    %cst_1 = arith.constant 1.000000e+00 : f32
    %1 = arith.subf %cst, %cst_1 : f32
    %2 = vector.broadcast %1 : f32 to vector<1x2048xf32>
    %3 = arith.maximumf %0, %2 : vector<1x2048xf32>
    %cst_2 = arith.constant 1.000000e+00 : f32
    %4 = vector.broadcast %cst_2 : f32 to vector<1x2048xf32>
    %5 = arith.minimumf %3, %4 : vector<1x2048xf32>
    %c0_3 = arith.constant 0 : index
    %c0_4 = arith.constant 0 : index
    %6 = vector.load %arg3[%c0_3, %c0_4] : memref<1x2048xf32, #tpu.memory_space<vmem>>, vector<1x2048xf32>
    tpu.vector_store %arg3[%c0_3, %c0_4], %5 {strides = array<i32>} : memref<1x2048xf32, #tpu.memory_space<vmem>>, vector<1x2048xf32>,
    return
  }
  func.func @transform_0(%arg0: i32, %arg1: i32) -> (i32, i32) {
    %c0_i32 = arith.constant 0 : i32
    return %arg0, %arg1 : i32, i32
  }
  func.func @transform_1(%arg0: i32, %arg1: i32) -> (i32, i32) {
    %c0_i32 = arith.constant 0 : i32
    return %arg0, %arg1 : i32, i32
  }
}

</mosaic_0001>

<bundles_post_ra>
// kernel: tpu_custom_call.1
= control target key start
LH: loop header
LB: loop body
LE: loop exit
PB: predicated region body
PF: predicated region fallthrough
CT: control target
= control target key end

     0   :  { %6 = vsyncpa [#allocation3], 0  ;;  %s122_s0 = inlined_call_operand.hbm [shape: f32[1,2048], index: 0, kind: input, shape index: {}]   ;;  %s123_s1 = inlined_call_operand.hbm [shape: f32[1,2048], index: 1, kind: output, shape index: {}]  }
   0x1   :  { %7 = vsyncpa [#allocation4], 0  ;;  %s13_s8 = sshll.u32 %s122_s0, 4  ;;  %s104_s9 = smov [#allocation2]   ;;  %s14_s8 = int_to_ptr.hbm [resolvable:$true] %s13_s8 }
   0x2   :  { %s15_s10 = sshll.u32 %s104_s9, 4  ;;  %s16_s10 = int_to_ptr.vmem [resolvable:$true] %s15_s10 }
   0x3   :  { %18 = dma.hbm_to_vmem [thread:$0]  %s14_s8, 256, %s16_s10, [#allocation3]  }
   0x4   :  { %100 = dma.done.wait [#allocation3], 256  }
   0x5   :  { %101 = vsyncadd [#allocation3], 4294967040  ;;  %s105_s11 = smov [#allocation5]   ;;  %s38_s15 = sshll.u32 %s123_s1, 4  ;;  %v23_v0 = vld [vmem:[#allocation2] sm:$0xff]  ;;  %v24_v1 = vld [vmem:[#allocation2 + $0x8] sm:$0xff]  ;;  %s39_s15 = int_to_ptr.hbm [resolvable:$true] %s38_s15 }
   0x6   :  { %s36_s12 = sshll.u32 %s105_s11, 4  ;;  %v48_v2 = vclamps-f32 %v23_v0, 1.0  ;;  %v49_v3 = vclamps-f32 %v24_v1, 1.0  ;;  %s37_s12 = int_to_ptr.vmem [resolvable:$true] %s36_s12 }
   0x8   :  { %29 = vst [vmem:[#allocation5] sm:$0xff] %v48_v2 }
   0x9   :  { %30 = vst [vmem:[#allocation5 + $0x8] sm:$0xff] %v49_v3 }
   0xa   :  { %41 = dma.vmem_to_hbm [thread:$0]  %s37_s12, 256, %s39_s15, [#allocation4]  }
   0xb   :  { %102 = dma.done.wait [#allocation4], 256  }
   0xc   :  { %103 = vsyncadd [#allocation4], 4294967040 }
   0xd   :  { %46 = vsyncpa [#allocation3], 1 }
   0xe   :  { %47 = vsyncpa [#allocation4], 1 }

</bundles_post_ra>
